<compile_context>
chip_gen: v7x
topology: tpu7x:2x2x1
jax: 0.10.0
libtpu: 0.0.40
codegen_flags: <defaults>
</compile_context>

<pallas_src>
import functools
import math

import jax
import jax.numpy as jnp
from jax import lax
from jax.experimental import pallas as pl
from jax.experimental.pallas import tpu as pltpu

# Module hyperparameters (from the PyTorch file)
HIDDEN_SIZE = 6          # RNN-style hyperparam; unused by forward(), kept for fidelity
INPUT_SIZE = 4
NUM_CLASSES = 1
NUM_LAYERS = 1
SEQ_LENGTH = 4
F_IN = SEQ_LENGTH * INPUT_SIZE   # 16
FC1_OUT = 20
FC2_OUT = 20

DEFAULT_TB = 32 * 1024           # rows per batch tile (see VMEM note above)
_MIN_ROWS_FOR_SPLIT = 16 * 1024  # ensure G >= 2 (megacore split) past this size


def _round_up(n, m):
    return ((n + m - 1) // m) * m


def _cdiv(n, m):
    return (n + m - 1) // m


def _bp_kernel(x_ref, w1_ref, b1_ref, w2_ref, b2_ref, w3t_ref, b3_ref, o_ref,
               *, chunk, n_chunks):
    # x_ref: (TB, 16) in the caller's dtype (f32).  Weights w1/w2 are PyTorch
    # (out, in) layout in the compute dtype; biases are f32 (out, 1) columns;
    # w3t is (FC2_OUT, NUM_CLASSES) f32 (used on the VPU).  All activations are
    # kept (features, chunk): batch on lanes -> dense vregs + lane-dense stores.
    cdt = w1_ref.dtype

    # Hoist the tiny resident parameters out of the chunk loop (a few vregs).
    w1 = w1_ref[...]          # (20, 16)
    b1 = b1_ref[...]          # (20, 1)  f32
    w2 = w2_ref[...]          # (20, 20)
    b2 = b2_ref[...]          # (20, 1)  f32
    w3t = w3t_ref[...]        # (20, NUM_CLASSES) f32
    b3 = b3_ref[...]          # (NUM_CLASSES, 1)  f32

    def process_chunk(off):
        # Per-chunk cast: x is streamed from HBM as f32, cast here (no extra
        # HBM pass in the wrapper).
        xc = x_ref[pl.ds(off, chunk), :].astype(cdt)              # (chunk, 16)

        # h1^T = relu(W1 @ xc^T + b1): contract both feature dims directly
        # (no materialized transpose of the x chunk).
        h = lax.dot_general(w1, xc, (((1,), (1,)), ((), ())),
                            preferred_element_type=jnp.float32)    # (20, chunk)
        h = jnp.maximum(h + b1, 0.0).astype(cdt)

        # h2^T = relu(W2 @ h1^T + b2)
        h = jnp.dot(w2, h, preferred_element_type=jnp.float32)     # (20, chunk)
        h = jnp.maximum(h + b2, 0.0)                               # keep f32

        # out^T = W3 @ h2^T + b3.  For NUM_CLASSES == 1 this is a (1,20)x(20,c)
        # matmul: do it as a VPU broadcast-multiply + XLU sublane sum instead of
        # an MXU push (frees the MXU-push slot; exact in f32).
        if NUM_CLASSES == 1:
            out = jnp.sum(w3t * h, axis=0, keepdims=True) + b3     # (1, chunk)
        else:  # general fallback (not used by this module)
            out = lax.dot_general(w3t, h, (((0,), (0,)), ((), ())),
                                  preferred_element_type=jnp.float32) + b3

        # Lane-dense store of the chunk's output row(s).
        o_ref[:, :, pl.ds(off, chunk)] = out[None].astype(o_ref.dtype)

    if n_chunks == 1:
        process_chunk(0)
    else:
        def body(c, carry):
            process_chunk(pl.multiple_of(c * chunk, 128))
            return carry
        lax.fori_loop(0, n_chunks, body, 0, unroll=min(n_chunks, 8))


def bp_forward(x, params, *, tb=DEFAULT_TB, compute_dtype=jnp.float32):
    """x: (B, seq_length, input_size) -> (B, num_classes) float32.

    compute_dtype=float32 (default) matches the PyTorch module bit-for-bit up to
    matmul rounding; jnp.bfloat16 is the faster streaming path (loose parity).
    """
    w1, b1, w2, b2, w3, b3 = params          # f32, PyTorch (out, in) layout
    B = x.shape[0]
    # x.view(-1, 16): a contiguous reshape (metadata only, no HBM copy).
    x_flat = x.reshape(B, F_IN)

    # --- Batch tiling -------------------------------------------------------
    tb = max(128, 128 * (int(tb) // 128))          # TB must be a multiple of 128
    TB = min(tb, _round_up(B, 128))
    # Keep >= 2 grid steps when there is enough work so the "parallel" batch
    # axis can split across the two v7x TensorCores.
    if B >= 2 * _MIN_ROWS_FOR_SPLIT:
        TB = min(TB, _round_up(_cdiv(B, 2), 1024))
    G = _cdiv(B, TB)
    # Only a single-tile batch can have a block taller than the array; pad the
    # rows up to TB in that (small, cheap) case.  For G >= 2 the ragged last
    # block simply over-reads; those rows are discarded by the [:B] slice.
    if B < TB:
        x_flat = jnp.pad(x_flat, ((0, TB - B), (0, 0)))

    # In-kernel batch chunk: largest 128-multiple divisor of TB that is <= 1024,
    # so the (20, chunk) intermediates stay in vregs.
    chunk = 128 * math.gcd(TB // 128, 8)
    n_chunks = TB // chunk

    w1c = w1.astype(compute_dtype)
    w2c = w2.astype(compute_dtype)
    w3t = w3.T.astype(jnp.float32)        # (FC2_OUT, NUM_CLASSES), used on VPU

    def resident(a):
        shape = a.shape
        # Constant index_map: fetched once, stays VMEM-resident across the grid.
        return pl.BlockSpec(shape, lambda i: (0,) * len(shape))

    # Cost estimate (HBM bytes actually moved; the lane padding below is VMEM-only).
    x_bytes = x_flat.size * x_flat.dtype.itemsize
    out_bytes = G * NUM_CLASSES * TB * 4
    param_bytes = sum(a.size * a.dtype.itemsize
                      for a in (w1c, b1, w2c, b2, w3t, b3))
    flops = 2 * B * (F_IN * FC1_OUT + FC1_OUT * FC2_OUT + FC2_OUT * NUM_CLASSES)

    # Explicit VMEM budget from the *padded* block footprints (x block's minor
    # dim 16 is lane-padded to 128; the (1, NC, TB) out block pads NC to 8
    # sublanes), double-buffered, plus headroom for params/compiler scratch.
    x_block_vmem = TB * _round_up(F_IN, 128) * x_flat.dtype.itemsize
    out_block_vmem = _round_up(NUM_CLASSES, 8) * TB * 4
    vmem_limit = int(max(2 * (x_block_vmem + out_block_vmem) + (4 << 20),
                         32 << 20))

    kernel = functools.partial(_bp_kernel, chunk=chunk, n_chunks=n_chunks)

    out_t = pl.pallas_call(
        kernel,
        out_shape=jax.ShapeDtypeStruct((G, NUM_CLASSES, TB), jnp.float32),
        grid=(G,),
        in_specs=[
            pl.BlockSpec((TB, F_IN), lambda i: (i, 0)),   # x: streamed per block
            resident(w1c), resident(b1),                  # params: VMEM-resident
            resident(w2c), resident(b2),
            resident(w3t), resident(b3),
        ],
        out_specs=pl.BlockSpec((1, NUM_CLASSES, TB), lambda i: (i, 0, 0)),
        compiler_params=pltpu.CompilerParams(
            dimension_semantics=("parallel",),
            vmem_limit_bytes=vmem_limit),
        cost_estimate=pl.CostEstimate(
            flops=flops, transcendentals=0,
            bytes_accessed=x_bytes + out_bytes + param_bytes),
    )(x_flat, w1c, b1, w2c, b2, w3t, b3)

    # (G, NC, TB) -> (B, NC): element (g, c, t) is row g*TB + t, class c.
    out = jnp.moveaxis(out_t, 1, 2).reshape(G * TB, NUM_CLASSES)[:B]
    return out


def bp_forward_auto(x, params, *, min_pallas_batch=2048, **kw):
    """Dispatch: for micro-batches the pallas_call launch + DMA setup dominates
    the ~1 us of real work, so let XLA fuse the three tiny matmuls instead."""
    if x.shape[0] < min_pallas_batch:
        return bp_reference(x, params)
    return bp_forward(x, params, **kw)


def init_params(key):
    """nn.Linear-style init (uniform +-1/sqrt(fan_in)), PyTorch (out, in) layout.

    Biases are stored as (out_features, 1) columns: the kernel computes in the
    transposed orientation, so a column bias broadcasts across the lane/batch
    dimension directly.
    """
    def linear(k, fan_in, fan_out):
        kw, kb = jax.random.split(k)
        bound = 1.0 / jnp.sqrt(fan_in)
        w = jax.random.uniform(kw, (fan_out, fan_in), jnp.float32, -bound, bound)
        b = jax.random.uniform(kb, (fan_out, 1), jnp.float32, -bound, bound)
        return w, b

    k1, k2, k3 = jax.random.split(key, 3)
    w1, b1 = linear(k1, F_IN, FC1_OUT)
    w2, b2 = linear(k2, FC1_OUT, FC2_OUT)
    w3, b3 = linear(k3, FC2_OUT, NUM_CLASSES)
    return w1, b1, w2, b2, w3, b3


def bp_reference(x, params):
    """Pure-JAX f32 reference (PyTorch forward semantics)."""
    w1, b1, w2, b2, w3, b3 = params
    out = x.reshape(x.shape[0], F_IN)
    out = jnp.maximum(out @ w1.T + b1[:, 0], 0.0)
    out = jnp.maximum(out @ w2.T + b2[:, 0], 0.0)
    out = out @ w3.T + b3[:, 0]
    return out
# TODO(synk): self.dropout = nn.Dropout(0.2) is defined but never used in
# forward(), so it is intentionally not applied here.


if __name__ == "__main__":
    key = jax.random.PRNGKey(0)
    k_params, k_x1, k_x2, k_x3 = jax.random.split(key, 4)
    params = init_params(k_params)

    # --- A: tiny batch (module-scale), default f32 parity path ---------------
    x = jax.random.normal(k_x1, (2, SEQ_LENGTH, INPUT_SIZE), jnp.float32)
    out = jax.block_until_ready(bp_forward(x, params))
    ref = bp_reference(x, params)
    assert out.shape == (2, NUM_CLASSES)
    assert jnp.allclose(out, ref, atol=1e-4, rtol=1e-4)

    # --- B: ragged multi-block grid (B=300, TB=128 -> G=3, tail over-read) ----
    xb = jax.random.normal(k_x2, (300, SEQ_LENGTH, INPUT_SIZE), jnp.float32)
    refb = bp_reference(xb, params)
    outb = jax.block_until_ready(bp_forward(xb, params, tb=128))
    assert outb.shape == (300, NUM_CLASSES)
    assert bool(jnp.all(jnp.isfinite(outb)))
    assert jnp.allclose(outb, refb, atol=1e-4, rtol=1e-4)

    # --- C: exercise the in-kernel chunk loop (TB=2048, chunk=1024, G=2) ------
    xc = jax.random.normal(k_x3, (4096, SEQ_LENGTH, INPUT_SIZE), jnp.float32)
    refc = bp_reference(xc, params)
    outc = jax.block_until_ready(bp_forward(xc, params, tb=2048))
    assert outc.shape == (4096, NUM_CLASSES)
    assert jnp.allclose(outc, refc, atol=1e-4, rtol=1e-4)

    # --- D: bf16 fast path (loose check vs f32 reference) ---------------------
    outc16 = jax.block_until_ready(
        bp_forward(xc, params, tb=2048, compute_dtype=jnp.bfloat16))
    assert outc16.shape == (4096, NUM_CLASSES)
    assert jnp.allclose(outc16, refc, atol=1e-1, rtol=1e-1)

    print("KERNEL_OK")
</pallas_src>

<mosaic_0001>
module attributes {stable_mosaic.version = 11 : i64} {
  func.func @_bp_kernel(%arg0: i32, %arg1: memref<128x16xf32, #tpu.memory_space<vmem>>, %arg2: memref<20x16xf32, #tpu.memory_space<vmem>>, %arg3: memref<20x1xf32, #tpu.memory_space<vmem>>, %arg4: memref<20x20xf32, #tpu.memory_space<vmem>>, %arg5: memref<20x1xf32, #tpu.memory_space<vmem>>, %arg6: memref<20x1xf32, #tpu.memory_space<vmem>>, %arg7: memref<1x1xf32, #tpu.memory_space<vmem>>, %arg8: memref<1x1x128xf32, #tpu.memory_space<vmem>>) attributes {dimension_semantics = [#tpu.dimension_semantics<parallel>], iteration_bounds = array<i64: 1>, scalar_prefetch = 0 : i64, scratch_operands = 0 : i64, tpu.core_type = #tpu.core_type<tc>, window_params = [{transform_indices = @transform_0, window_bounds = array<i64: 128, 16>}, {pipeline_mode = #tpu.pipeline_mode<synchronous>, transform_indices = @transform_1, window_bounds = array<i64: 20, 16>}, {pipeline_mode = #tpu.pipeline_mode<synchronous>, transform_indices = @transform_2, window_bounds = array<i64: 20, 1>}, {pipeline_mode = #tpu.pipeline_mode<synchronous>, transform_indices = @transform_3, window_bounds = array<i64: 20, 20>}, {pipeline_mode = #tpu.pipeline_mode<synchronous>, transform_indices = @transform_4, window_bounds = array<i64: 20, 1>}, {pipeline_mode = #tpu.pipeline_mode<synchronous>, transform_indices = @transform_5, window_bounds = array<i64: 20, 1>}, {pipeline_mode = #tpu.pipeline_mode<synchronous>, transform_indices = @transform_6, window_bounds = array<i64: 1, 1>}, {transform_indices = @transform_7, window_bounds = array<i64: 1, 1, 128>}]} {
    %c0 = arith.constant 0 : index
    %c0_0 = arith.constant 0 : index
    %0 = vector.load %arg2[%c0, %c0_0] : memref<20x16xf32, #tpu.memory_space<vmem>>, vector<20x16xf32>
    %c0_1 = arith.constant 0 : index
    %c0_2 = arith.constant 0 : index
    %1 = vector.load %arg3[%c0_1, %c0_2] : memref<20x1xf32, #tpu.memory_space<vmem>>, vector<20x1xf32>
    %c0_3 = arith.constant 0 : index
    %c0_4 = arith.constant 0 : index
    %2 = vector.load %arg4[%c0_3, %c0_4] : memref<20x20xf32, #tpu.memory_space<vmem>>, vector<20x20xf32>
    %c0_5 = arith.constant 0 : index
    %c0_6 = arith.constant 0 : index
    %3 = vector.load %arg5[%c0_5, %c0_6] : memref<20x1xf32, #tpu.memory_space<vmem>>, vector<20x1xf32>
    %c0_7 = arith.constant 0 : index
    %c0_8 = arith.constant 0 : index
    %4 = vector.load %arg6[%c0_7, %c0_8] : memref<20x1xf32, #tpu.memory_space<vmem>>, vector<20x1xf32>
    %c0_9 = arith.constant 0 : index
    %c0_10 = arith.constant 0 : index
    %5 = vector.load %arg7[%c0_9, %c0_10] : memref<1x1xf32, #tpu.memory_space<vmem>>, vector<1x1xf32>
    %c0_11 = arith.constant 0 : index
    %c0_12 = arith.constant 0 : index
    %6 = vector.load %arg1[%c0_11, %c0_12] : memref<128x16xf32, #tpu.memory_space<vmem>>, vector<128x16xf32>
    %cst = arith.constant dense<0.000000e+00> : vector<20x128xf32>
    %7 = tpu.matmul %0, %6, %cst {dimension_numbers = #tpu.dot_dimension_numbers<[1], [1], [0], [0], [0, 0, 1, 0], [], []>} : vector<20x16xf32>, vector<128x16xf32>, vector<20x128xf32> -> vector<20x128xf32>
    %8 = vector.broadcast %1 : vector<20x1xf32> to vector<20x128xf32>
    %9 = arith.addf %7, %8 : vector<20x128xf32>
    %cst_13 = arith.constant 0.000000e+00 : f32
    %10 = vector.broadcast %cst_13 : f32 to vector<20x128xf32>
    %11 = arith.maximumf %9, %10 : vector<20x128xf32>
    %cst_14 = arith.constant dense<0.000000e+00> : vector<20x128xf32>
    %12 = tpu.matmul %2, %11, %cst_14 {dimension_numbers = #tpu.dot_dimension_numbers<[1], [0], [0], [1], [0, 0, 1, 1], [], []>} : vector<20x20xf32>, vector<20x128xf32>, vector<20x128xf32> -> vector<20x128xf32>
    %13 = vector.broadcast %3 : vector<20x1xf32> to vector<20x128xf32>
    %14 = arith.addf %12, %13 : vector<20x128xf32>
    %cst_15 = arith.constant 0.000000e+00 : f32
    %15 = vector.broadcast %cst_15 : f32 to vector<20x128xf32>
    %16 = arith.maximumf %14, %15 : vector<20x128xf32>
    %17 = vector.broadcast %4 : vector<20x1xf32> to vector<20x128xf32>
    %18 = arith.mulf %17, %16 : vector<20x128xf32>
    %cst_16 = arith.constant dense<0.000000e+00> : vector<128xf32>
    %19 = vector.multi_reduction <add>, %18, %cst_16 [0] : vector<20x128xf32> to vector<128xf32>
    %20 = vector.shape_cast %19 : vector<128xf32> to vector<1x128xf32>
    %21 = vector.broadcast %5 : vector<1x1xf32> to vector<1x128xf32>
    %22 = arith.addf %20, %21 : vector<1x128xf32>
    %23 = vector.shape_cast %22 : vector<1x128xf32> to vector<1x1x128xf32>
    %c0_17 = arith.constant 0 : index
    %c0_18 = arith.constant 0 : index
    %c0_19 = arith.constant 0 : index
    %24 = vector.load %arg8[%c0_17, %c0_18, %c0_19] : memref<1x1x128xf32, #tpu.memory_space<vmem>>, vector<1x1x128xf32>
    tpu.vector_store %arg8[%c0_17, %c0_18, %c0_19], %23 {strides = array<i32>} : memref<1x1x128xf32, #tpu.memory_space<vmem>>, vector<1x1x128xf32>,
    return
  }
  func.func @transform_0(%arg0: i32) -> (i32, i32) {
    %c0_i32 = arith.constant 0 : i32
    %c0_i32_0 = arith.constant 0 : i32
    return %arg0, %c0_i32 : i32, i32
  }
  func.func @transform_1(%arg0: i32) -> (i32, i32) {
    %c0_i32 = arith.constant 0 : i32
    %c0_i32_0 = arith.constant 0 : i32
    %c0_i32_1 = arith.constant 0 : i32
    return %c0_i32, %c0_i32_0 : i32, i32
  }
  func.func @transform_2(%arg0: i32) -> (i32, i32) {
    %c0_i32 = arith.constant 0 : i32
    %c0_i32_0 = arith.constant 0 : i32
    %c0_i32_1 = arith.constant 0 : i32
    return %c0_i32, %c0_i32_0 : i32, i32
  }
  func.func @transform_3(%arg0: i32) -> (i32, i32) {
    %c0_i32 = arith.constant 0 : i32
    %c0_i32_0 = arith.constant 0 : i32
    %c0_i32_1 = arith.constant 0 : i32
    return %c0_i32, %c0_i32_0 : i32, i32
  }
  func.func @transform_4(%arg0: i32) -> (i32, i32) {
    %c0_i32 = arith.constant 0 : i32
    %c0_i32_0 = arith.constant 0 : i32
    %c0_i32_1 = arith.constant 0 : i32
    return %c0_i32, %c0_i32_0 : i32, i32
  }
  func.func @transform_5(%arg0: i32) -> (i32, i32) {
    %c0_i32 = arith.constant 0 : i32
    %c0_i32_0 = arith.constant 0 : i32
    %c0_i32_1 = arith.constant 0 : i32
    return %c0_i32, %c0_i32_0 : i32, i32
  }
  func.func @transform_6(%arg0: i32) -> (i32, i32) {
    %c0_i32 = arith.constant 0 : i32
    %c0_i32_0 = arith.constant 0 : i32
    %c0_i32_1 = arith.constant 0 : i32
    return %c0_i32, %c0_i32_0 : i32, i32
  }
  func.func @transform_7(%arg0: i32) -> (i32, i32, i32) {
    %c0_i32 = arith.constant 0 : i32
    %c0_i32_0 = arith.constant 0 : i32
    %c0_i32_1 = arith.constant 0 : i32
    return %arg0, %c0_i32, %c0_i32_0 : i32, i32, i32
  }
}

</mosaic_0001>

<bundles_post_ra>
// kernel: tpu_custom_call.1
= control target key start
LH: loop header
LB: loop body
LE: loop exit
PB: predicated region body
PF: predicated region fallthrough
CT: control target
= control target key end

     0   :  { %s753_s0 = inlined_call_operand.vmem [shape: f32[128,16], index: 0, kind: input, shape index: {}]   ;;  %s754_s1 = inlined_call_operand.vmem [shape: f32[20,16], index: 1, kind: input, shape index: {}]   ;;  %s755_s2 = inlined_call_operand.vmem [shape: f32[20,1], index: 2, kind: input, shape index: {}]   ;;  %s756_s3 = inlined_call_operand.vmem [shape: f32[20,20], index: 3, kind: input, shape index: {}]   ;;  %s757_s4 = inlined_call_operand.vmem [shape: f32[20,1], index: 4, kind: input, shape index: {}]   ;;  %s758_s5 = inlined_call_operand.vmem [shape: f32[20,1], index: 5, kind: input, shape index: {}]   ;;  %s759_s6 = inlined_call_operand.<no memory space> [shape: f32[1,1], index: 6, kind: input, shape index: {}]   ;;  %s760_s7 = inlined_call_operand.hbm [shape: f32[1,1,128], index: 7, kind: output, shape index: {}]  }
   0x1   :  { %v12_v0 = vstv %s759_s6 }
   0x2   :  { %13 = vst [vmem:[#allocation2] sm:$0x1] %v12_v0 }
   0x3   :  { %v45_v1 = vld [vmem:[%s753_s0] sm:$0xff]  ;;  %v46_v2 = vld [vmem:[%s753_s0 + $0x8] sm:$0xff]  ;;  %vm76_vm0 = vcmask 130048   ;;  %v551_v3 = vmov 0.0|0.0   ;;  %vm552_vm2 = vmmov 0   ;;  %v553_v6 = vmov 0.0  }
   0x4   :  { %485 = vmatprep.subr.bf16.mxu0 %v551_v3  ;;  %v486_v4 = vpack.c.bf16 %v46_v2, %v45_v1  ;;  %vm608_vm1 = vmpackc.low %vm76_vm0, %vm76_vm0  ;;  %517 = vmatprep.subr.bf16.mxu1 %v551_v3  ;;  %v554_v7 = vmov 0   ;;  %v47_v8 = vld [vmem:[%s753_s0 + $0x10] sm:$0xff]  ;;  %v48_v9 = vld [vmem:[%s753_s0 + $0x18] sm:$0xff] }
   0x5   :  { %461 = vmatprep.mubr.msk.f32.mxu0 %vm552_vm2, %v553_v6  ;;  %525 = vset.pattern.permute.xlu0 %v554_v7  ;;  %v32_v10 = vld [vmem:[%s755_s2] sm:$0xff]  ;;  %v490_v11 = vpack.c.bf16 %v48_v9, %v47_v8  ;;  %v34_v12 = vld [vmem:[%s755_s2 + $0x10] sm:$0xf]  ;;  %v33_v13 = vld [vmem:[%s755_s2 + $0x8] sm:$0xff] }
   0x6   :  { %488 = vmatpush3.bf16.xpose.msk.msra.mxu0 %vm608_vm1, %v486_v4  ;;  %526 = vset.pattern.permute.xlu1 %v554_v7  ;;  %v38_v14 = vld [vmem:[%s757_s4] sm:$0xff] }
   0x7   :  { %489 = vmatprep.subr.bf16.mxu0 %v551_v3  ;;  %476 = vmatprep.mubr.msk.f32.mxu1 %vm552_vm2, %v553_v6 }
   0x8   :  { %63 = vperm.xlu0 %525, %v32_v10   ;;  %73 = vperm.xlu1 %526, %v34_v12  }
   0x9   :  { %14 = vsyncpa [#allocation4], 0  ;;  %v49_v15 = vld [vmem:[%s753_s0 + $0x20] sm:$0xff]  ;;  %v50_v16 = vld [vmem:[%s753_s0 + $0x28] sm:$0xff]  ;;  %vm242_vm3 = vcmask 1043456   ;;  %vm232_vm4 = vcmask 162816  }
   0xa   :  { %v39_v17 = vld [vmem:[%s757_s4 + $0x8] sm:$0xff]  ;;  %v40_v18 = vld [vmem:[%s757_s4 + $0x10] sm:$0xf]  ;;  %v494_v19 = vpack.c.bf16 %v50_v16, %v49_v15  ;;  %v41_v20 = vld [vmem:[%s758_s5] sm:$0xff] }
   0xb   :  { %v42_v21 = vld [vmem:[%s758_s5 + $0x8] sm:$0xff]  ;;  %v51_v22 = vld [vmem:[%s753_s0 + $0x30] sm:$0xff]  ;;  %v52_v23 = vld [vmem:[%s753_s0 + $0x38] sm:$0xff] }
   0xc   :  { %68 = vperm.xlu0 %525, %v33_v13   ;;  %219 = vperm.xlu1 %526, %v38_v14   ;;  %v43_v24 = vld [vmem:[%s758_s5 + $0x10] sm:$0xf]  ;;  %v44_v25 = vld [vmem:[#allocation2] sm:$0x1]  ;;  %v498_v26 = vpack.c.bf16 %v52_v23, %v51_v22  ;;  %v54_v28 = vld [vmem:[%s753_s0 + $0x48] sm:$0xff] }
   0xd   :  { %v53_v27 = vld [vmem:[%s753_s0 + $0x40] sm:$0xff]  ;;  %v55_v30 = vld [vmem:[%s753_s0 + $0x50] sm:$0xff]  ;;  %v56_v31 = vld [vmem:[%s753_s0 + $0x58] sm:$0xff] }
   0xe   :  { %492 = vmatpush3.bf16.xpose.msk.msra.mxu0 %vm608_vm1, %v490_v11  ;;  %v502_v29 = vpack.c.bf16 %v54_v28, %v53_v27  ;;  %v506_v32 = vpack.c.bf16 %v56_v31, %v55_v30  ;;  %v57_v33 = vld [vmem:[%s753_s0 + $0x60] sm:$0xff]  ;;  %v58_v34 = vld [vmem:[%s753_s0 + $0x68] sm:$0xff]  ;;  %v59_v36 = vld [vmem:[%s753_s0 + $0x70] sm:$0xff] }
   0xf   :  { %493 = vmatprep.subr.bf16.mxu0 %v551_v3  ;;  %v510_v35 = vpack.c.bf16 %v58_v34, %v57_v33  ;;  %v60_v37 = vld [vmem:[%s753_s0 + $0x78] sm:$0xff]  ;;  %v29_v39 = vld [vmem:[%s754_s1] sm:$0xff]  ;;  %v30_v40 = vld [vmem:[%s754_s1 + $0x8] sm:$0xff] }
  0x10   :  { %224 = vperm.xlu0 %525, %v39_v17   ;;  %229 = vperm.xlu1 %526, %v40_v18   ;;  %v514_v38 = vpack.c.bf16 %v60_v37, %v59_v36  ;;  %v31_v41 = vld [vmem:[%s754_s1 + $0x10] sm:$0xf]  ;;  %v35_v58 = vld [vmem:[%s756_s3] sm:$0xff]  ;;  %v36_v59 = vld [vmem:[%s756_s3 + $0x8] sm:$0xff] }
  0x11   :  { %v37_v60 = vld [vmem:[%s756_s3 + $0x10] sm:$0xf]  ;;  %s555_s3 = smov [#allocation3]  }
  0x12   :  { %s373_s9 = sshll.u32 %s555_s3, 4  ;;  %s374_s9 = int_to_ptr.vmem [resolvable:$true] %s373_s9 }
  0x13   :  { %s527_s10 = scalar_lea.vmem %s374_s9, 16  ;;  %s531_s11 = scalar_lea.vmem %s374_s9, 32 }
  0x14   :  { %331 = vperm.xlu0 %525, %v41_v20   ;;  %336 = vperm.xlu1 %526, %v42_v21   ;;  %v361_v20 = vlaneseq  ;;  %p528_p0 = scmp.ne.s32.totalorder %s374_s9, %s527_s10  ;;  %p532_p1 = scmp.lt.s32.totalorder %s374_s9, %s374_s9 }
  0x15   :  { %p533_p2 = scmp.lt.s32.totalorder %s531_s11, %s527_s10 }
  0x16   :  { %496 = vmatpush3.bf16.xpose.msk.msra.mxu0 %vm608_vm1, %v494_v19  ;;  %v362_v23 = vshrl.u32 %v361_v20, 7 }
  0x17   :  { %497 = vmatprep.subr.bf16.mxu0 %v551_v3  ;;  %p534_p3 = por %p533_p2, %p532_p1 }
  0x18   :  { %341 = vperm.xlu0 %525, %v43_v24   ;;  %358 = vperm.xlu1 %526, %v44_v25  }
  0x19   :  { %p535_p4 = pnand %p534_p3, %p528_p0 }
  0x1e   :  { %500 = vmatpush3.bf16.xpose.msk.msra.mxu0 %vm608_vm1, %v498_v26  ;;  %v363_v26 = vsub.s32 0, %v362_v23 }
  0x1f   :  { %501 = vmatprep.subr.bf16.mxu0 %v551_v3 }
  0x26   :  { %504 = vmatpush3.bf16.xpose.msk.msra.mxu0 %vm608_vm1, %v502_v29 }
  0x27   :  { %505 = vmatprep.subr.bf16.mxu0 %v551_v3 }
  0x2e   :  { %508 = vmatpush3.bf16.xpose.msk.msra.mxu0 %vm608_vm1, %v506_v32 }
  0x2f   :  { %509 = vmatprep.subr.bf16.mxu0 %v551_v3 }
  0x36   :  { %512 = vmatpush3.bf16.xpose.msk.msra.mxu0 %vm608_vm1, %v510_v35 }
  0x37   :  { %513 = vmatprep.subr.bf16.mxu0 %v551_v3 }
  0x3e   :  { %516 = vmatpush3.bf16.xpose.msk.msra.mxu0 %vm608_vm1, %v514_v38 }
  0x45   :  { %462 = vmatmul.mubr.msk.f32.vlgmr.msra.gmra.mrb[0].mxu0 %vm76_vm0, %v29_v39 }
  0x46   :  { %464 = vmatprep.mubr.msk.f32.mxu0 %vm552_vm2, %v553_v6 }
  0x49   :  { %465 = vmatmul.mubr.msk.f32.gmra.mrb[2].mxu0 %vm76_vm0, %v30_v40 }
  0x4a   :  { %467 = vmatprep.mubr.msk.f32.mxu0 %vm552_vm2, %v553_v6 }
  0x4d   :  { %468 = vmatmul.mubr.msk.f32.gmra.mrb[4].mxu0 %vm76_vm0, %v31_v41 }
  0x87   :  { %v64_v42 = vpop.permute.xlu0 %63  ;;  %v74_v52 = vpop.permute.xlu1 %73 }
  0x8b   :  { %v69_v46 = vpop.permute.xlu0 %68  ;;  %v220_v61 = vpop.permute.xlu1 %219 }
  0x8f   :  { %v225_v62 = vpop.permute.xlu0 %224  ;;  %v230_v2 = vpop.permute.xlu1 %229 }
  0x93   :  { %v332_v8 = vpop.permute.xlu0 %331  ;;  %v337_v10 = vpop.permute.xlu1 %336 }
  0x97   :  { %v342_v17 = vpop.permute.xlu0 %341  ;;  %v359_v28 = vpop.permute.xlu1 %358 }
  0x98   :  { %v364_v30 = vrot.slane %v359_v28, %v363_v26 }
 0x118   :  { %v200_v43 = vpop.f32.mrb[0].mxu0 }
 0x119   :  { %v463_v44 = vpop.f32.mrb[1].mxu0  ;;  %v201_v45 = vadd.f32 %v200_v43, %v64_v42 }
 0x11b   :  { %v214_v50 = vmax.f32 %v201_v45, 0.0 }
 0x11c   :  { %v205_v47 = vpop.f32.mrb[2].mxu0 }
 0x11d   :  { %v206_v48 = vadd.f32 %v205_v47, %v69_v46  ;;  %v466_v49 = vpop.f32.mrb[3].mxu0 }
 0x11f   :  { %v215_v51 = vmax.f32 %v206_v48, 0.0 }
 0x120   :  { %v210_v53 = vpop.f32.mrb[4].mxu0 }
 0x121   :  { %v211_v54 = vadd.f32 %v210_v53, %v74_v52  ;;  %v469_v55 = vpop.f32.mrb[5].mxu0  ;;  %v518_v56 = vpack.c.bf16 %v215_v51, %v214_v50 }
 0x123   :  { %v216_v57 = vmax.f32 %v211_v54, 0.0  ;;  %519 = vmatpush3.bf16.msra.mxu1 %v518_v56 }
 0x124   :  { %474 = vmatprep.subr.mxu1 %v553_v6 }
 0x127   :  { %475 = vmatpush3.msk.msra.mxu1 %vm242_vm3, %v216_v57 }
 0x128   :  { %477 = vmatmul.mubr.msk.f32.vlgmr.msra.gmra.mrb[0].mxu1 %vm232_vm4, %v35_v58 }
 0x129   :  { %479 = vmatprep.mubr.msk.f32.mxu1 %vm552_vm2, %v553_v6 }
 0x12c   :  { %480 = vmatmul.mubr.msk.f32.gmra.mrb[2].mxu1 %vm232_vm4, %v36_v59 }
 0x12d   :  { %482 = vmatprep.mubr.msk.f32.mxu1 %vm552_vm2, %v553_v6 }
 0x130   :  { %483 = vmatmul.mubr.msk.f32.gmra.mrb[4].mxu1 %vm232_vm4, %v37_v60 }
 0x1fb   :  { %v312_v63 = vpop.f32.mrb[0].mxu1 }
 0x1fc   :  { %v313_v0 = vadd.f32 %v312_v63, %v220_v61  ;;  %v478_v1 = vpop.f32.mrb[1].mxu1 }
 0x1fe   :  { %v326_v4 = vmax.f32 %v313_v0, 0.0 }
 0x1ff   :  { %v317_v3 = vpop.f32.mrb[2].mxu1 }
 0x200   :  { %v318_v5 = vadd.f32 %v317_v3, %v225_v62  ;;  %v481_v7 = vpop.f32.mrb[3].mxu1  ;;  %v344_v6 = vmul.f32 %v332_v8, %v326_v4 }
 0x202   :  { %v327_v9 = vmax.f32 %v318_v5, 0.0 }
 0x203   :  { %v322_v11 = vpop.f32.mrb[4].mxu1 }
 0x204   :  { %v345_v12 = vmul.f32 %v337_v10, %v327_v9  ;;  %v323_v13 = vadd.f32 %v322_v11, %v230_v2  ;;  %v484_v14 = vpop.f32.mrb[5].mxu1 }
 0x206   :  { %v347_v15 = vadd.f32 %v345_v12, %v344_v6  ;;  %v328_v16 = vmax.f32 %v323_v13, 0.0 }
 0x208   :  { %v346_v18 = vmul.f32 %v342_v17, %v328_v16 }
 0x20a   :  { %v348_v19 = vsel %vm242_vm3, %v346_v18, 0.0 }
 0x20b   :  { %v349_v21 = vadd.f32 %v348_v19, %v347_v15 }
 0x20d   :  { %v350_v22 = vrot.slane %v349_v21, 4 }
 0x20f   :  { %v351_v24 = vadd.f32 %v350_v22, %v349_v21 }
 0x211   :  { %v352_v25 = vrot.slane %v351_v24, 2 }
 0x213   :  { %v353_v27 = vadd.f32 %v352_v25, %v351_v24 }
 0x215   :  { %v354_v29 = vrot.slane %v353_v27, 1 }
 0x217   :  { %v355_v31 = vadd.f32 %v354_v29, %v353_v27 }
 0x219   :  { %v365_v32 = vadd.f32 %v364_v30, %v355_v31 }
 0x21b   :  { %366 = vst [vmem:[#allocation3] sm:$0x1] %v365_v32 }
 0x21c   :  { %538 = shalt.err (!%p535_p4)
}
 0x21d   :  { %s539_s5 = scalar_lea.hbm %s760_s7, 16 }
 0x21e   :  { %p540_p5 = scmp.ne.s32.totalorder %s760_s7, %s539_s5  ;;  %p543_p6 = scmp.lt.u32.totalorder %s539_s5, %s760_s7 }
 0x220   :  { %p545_p7 = pnand %p543_p6, %p540_p5 }
 0x222   :  { %548 = shalt.err (!%p545_p7)
}
 0x223   :  { %376 = dma.vmem_to_hbm [thread:$0]  %s374_s9, 16, %s760_s7, [#allocation4]  }
 0x224   :  { %549 = dma.done.wait [#allocation4], 16  }
 0x225   :  { %550 = vsyncadd [#allocation4], 4294967280 }
 0x226   :  { %380 = vsyncpa [#allocation4], 1 }

</bundles_post_ra>
